<compile_context>
chip_gen: v6e
topology: v6e:2x2x1
jax: 0.10.0
libtpu: 0.0.40
codegen_flags: <defaults>
</compile_context>

<pallas_src>
import functools

import jax
import jax.numpy as jnp
from jax import lax
from jax.experimental import pallas as pl
from jax.experimental.pallas import tpu as pltpu

_LANES = 128
_SUBLANES = 8


def _dice_partial_kernel(o_ref, l_ref, m_ref, inter_ref, den_ref, *,
                         tile_rows, rows_total):
    c = pl.program_id(0)           # core-split axis ("parallel")
    s = pl.program_id(1)           # reduction axis ("arbitrary")
    steps = pl.num_programs(1)

    @pl.when(s == 0)
    def _init():
        inter_ref[...] = jnp.zeros_like(inter_ref)
        den_ref[...] = jnp.zeros_like(den_ref)

    logical_block = c * steps + s
    row0 = logical_block * tile_rows

    def accumulate(row_valid):
        m = m_ref[...]
        if jnp.issubdtype(m.dtype, jnp.floating):
            # Compare in the mask's native dtype (bf16 compare is native on
            # v6e/v7x; Mosaic widens automatically on v5e).
            sel = m >= jnp.asarray(0.5, dtype=m.dtype)
        else:
            sel = m.astype(jnp.float32) >= jnp.float32(0.5)
        if row_valid is not None:
            sel = jnp.logical_and(sel, row_valid)
        # Select (not multiply) so garbage/NaN in masked regions can't leak.
        o_f = jnp.where(sel, o_ref[...].astype(jnp.float32), 0.0)
        l_f = jnp.where(sel, l_ref[...].astype(jnp.float32), 0.0)

        def fold(x):
            # (tile_rows, 128) -> (tile_rows//8, 8, 128) -> vreg-sized partial.
            return jnp.sum(
                x.reshape(tile_rows // _SUBLANES, _SUBLANES, _LANES),
                axis=0, keepdims=True)

        inter_ref[...] += fold(o_f * l_f)
        den_ref[...] += fold(o_f + l_f)      # fused denominator (sum_o + sum_l)

    # Only the last (partial) logical block per split — or a clamped-duplicate
    # block when the split doesn't divide evenly — needs the row bound.
    is_full = (row0 + tile_rows) <= rows_total

    @pl.when(is_full)
    def _fast():
        accumulate(None)

    @pl.when(jnp.logical_not(is_full))
    def _slow():
        rid = lax.broadcasted_iota(jnp.int32, (tile_rows, _LANES), 0)
        accumulate(rid < (rows_total - row0))   # negative bound => all invalid


def _num_tensorcores_per_chip():
    """2 on v7x (megacore split pays off), 1 on v5e/v6e."""
    try:
        kind = jax.devices()[0].device_kind.lower()
    except Exception:
        return 1
    return 2 if "v7" in kind else 1


def _masked_sums(o, l, m):
    """Tiny f32 masked partial sums for the <128-element tail (pure XLA)."""
    if jnp.issubdtype(m.dtype, jnp.floating):
        sel = m >= jnp.asarray(0.5, dtype=m.dtype)
    else:
        sel = m.astype(jnp.float32) >= jnp.float32(0.5)
    o_f = jnp.where(sel, o.astype(jnp.float32), 0.0)
    l_f = jnp.where(sel, l.astype(jnp.float32), 0.0)
    return jnp.sum(o_f * l_f), jnp.sum(o_f + l_f)


def dice_loss(output, label, mask, *, tile_rows=4096, n_splits=None):
    """Pallas TPU implementation of DiceLoss.forward(output, label, mask)."""
    total = int(output.size)
    rows_all = total // _LANES                 # full lane-rows (no padding)
    use_kernel = rows_all >= _SUBLANES
    kernel_elems = rows_all * _LANES if use_kernel else 0
    tail_len = total - kernel_elems            # < 128 (or < 1024 for tiny inputs)

    o_flat = jnp.ravel(output)
    l_flat = jnp.ravel(label)
    m_flat = jnp.ravel(mask)

    inter = jnp.float32(0.0)
    den = jnp.float32(0.0)

    if use_kernel:
        def prep(flat):
            if kernel_elems != total:
                # Rare misaligned case (total % 128 != 0): kernel consumes the
                # aligned prefix only; the tiny remainder is summed in XLA.
                # TODO(synk): this prefix slice may still materialize a copy;
                # all NCHW-style sizes take the zero-copy reshape path.
                flat = lax.slice(flat, (0,), (kernel_elems,))
            return flat.reshape(rows_all, _LANES)

        o2, l2, m2 = prep(o_flat), prep(l_flat), prep(m_flat)

        # Largest usable multiple-of-8 tile that does not exceed the array.
        max_tile = (rows_all // _SUBLANES) * _SUBLANES
        tr = max(_SUBLANES, min(int(tile_rows), max_tile))
        tr = (tr // _SUBLANES) * _SUBLANES
        nblocks = -(-rows_all // tr)

        splits = _num_tensorcores_per_chip() if n_splits is None else int(n_splits)
        splits = max(1, min(splits, nblocks))
        steps = -(-nblocks // splits)

        def in_map(c, s):
            # Clamp so the DMA always targets an existing block; the kernel
            # zeroes the contribution of clamped/duplicated blocks.
            return (jnp.minimum(c * steps + s, nblocks - 1), 0)

        tile_spec = pl.BlockSpec((tr, _LANES), in_map)
        acc_spec = pl.BlockSpec((1, _SUBLANES, _LANES), lambda c, s: (c, 0, 0))
        acc_shape = jax.ShapeDtypeStruct((splits, _SUBLANES, _LANES), jnp.float32)

        kernel = functools.partial(_dice_partial_kernel,
                                   tile_rows=tr, rows_total=rows_all)

        bytes_in = int(o2.size * o2.dtype.itemsize
                       + l2.size * l2.dtype.itemsize
                       + m2.size * m2.dtype.itemsize)

        inter_p, den_p = pl.pallas_call(
            kernel,
            out_shape=(acc_shape, acc_shape),
            grid_spec=pltpu.PrefetchScalarGridSpec(
                num_scalar_prefetch=0,
                grid=(splits, steps),
                in_specs=[tile_spec, tile_spec, tile_spec],
                out_specs=(acc_spec, acc_spec),
            ),
            compiler_params=pltpu.CompilerParams(
                dimension_semantics=("parallel", "arbitrary"),
                vmem_limit_bytes=32 * 1024 * 1024),
            cost_estimate=pl.CostEstimate(
                flops=5 * kernel_elems,
                transcendentals=0,
                bytes_accessed=bytes_in),
        )(o2, l2, m2)

        inter = inter + jnp.sum(inter_p)
        den = den + jnp.sum(den_p)

    if tail_len:
        i_t, d_t = _masked_sums(o_flat[kernel_elems:],
                                l_flat[kernel_elems:],
                                m_flat[kernel_elems:])
        inter = inter + i_t
        den = den + d_t

    smooth = jnp.float32(1.0)
    return jnp.float32(1.0) - jnp.float32(2.0) * (inter + smooth) / (den + smooth)


def _dice_loss_ref(output, label, mask):
    """Pure-JAX reference mirroring the PyTorch forward (for N > 0)."""
    sel = mask.astype(jnp.float32) >= 0.5
    o = jnp.where(sel, output.astype(jnp.float32), 0.0)
    l = jnp.where(sel, label.astype(jnp.float32), 0.0)
    smooth = 1.0
    inter = jnp.sum(o * l)
    return 1.0 - 2.0 * (inter + smooth) / (jnp.sum(o) + jnp.sum(l) + smooth)


if __name__ == "__main__":
    # DiceLoss has no learnable parameters; nothing to initialize.
    key = jax.random.PRNGKey(0)
    k1, k2, k3 = jax.random.split(key, 3)
    shape = (2, 4, 16, 16)  # NCHW, small synthetic shapes
    output = jax.random.uniform(k1, shape, dtype=jnp.float32)
    label = (jax.random.uniform(k2, shape, dtype=jnp.float32) > 0.5).astype(
        jnp.float32)
    mask = jax.random.uniform(k3, shape, dtype=jnp.float32)

    loss = jax.block_until_ready(dice_loss(output, label, mask))
    ref = jax.block_until_ready(_dice_loss_ref(output, label, mask))

    assert jnp.allclose(loss, ref, atol=1e-5, rtol=1e-5), (loss, ref)
    print("KERNEL_OK")
</pallas_src>

<mosaic_0001>
module attributes {stable_mosaic.version = 11 : i64} {
  func.func @_dice_partial_kernel(%arg0: i32, %arg1: i32, %arg2: memref<16x128xf32, #tpu.memory_space<vmem>>, %arg3: memref<16x128xf32, #tpu.memory_space<vmem>>, %arg4: memref<16x128xf32, #tpu.memory_space<vmem>>, %arg5: memref<1x8x128xf32, #tpu.memory_space<vmem>>, %arg6: memref<1x8x128xf32, #tpu.memory_space<vmem>>) attributes {dimension_semantics = [#tpu.dimension_semantics<parallel>, #tpu.dimension_semantics<arbitrary>], iteration_bounds = array<i64: 1, 1>, scalar_prefetch = 0 : i64, scratch_operands = 0 : i64, tpu.core_type = #tpu.core_type<tc>, window_params = [{transform_indices = @transform_0, window_bounds = array<i64: 16, 128>}, {transform_indices = @transform_1, window_bounds = array<i64: 16, 128>}, {transform_indices = @transform_2, window_bounds = array<i64: 16, 128>}, {transform_indices = @transform_3, window_bounds = array<i64: 1, 8, 128>}, {transform_indices = @transform_4, window_bounds = array<i64: 1, 8, 128>}]} {
    %c0_i32 = arith.constant 0 : i32
    %0 = arith.cmpi eq, %arg1, %c0_i32 : i32
    %1 = arith.extui %0 : i1 to i32
    %c0_i32_0 = arith.constant 0 : i32
    %2 = arith.cmpi ne, %1, %c0_i32_0 : i32
    scf.if %2 {
      %cst = arith.constant 0.000000e+00 : f32
      %13 = vector.broadcast %cst : f32 to vector<1x8x128xf32>
      %c0 = arith.constant 0 : index
      %c0_5 = arith.constant 0 : index
      %c0_6 = arith.constant 0 : index
      %14 = vector.load %arg5[%c0, %c0_5, %c0_6] : memref<1x8x128xf32, #tpu.memory_space<vmem>>, vector<1x8x128xf32>
      tpu.vector_store %arg5[%c0, %c0_5, %c0_6], %13 {strides = array<i32>} : memref<1x8x128xf32, #tpu.memory_space<vmem>>, vector<1x8x128xf32>,
      %cst_7 = arith.constant 0.000000e+00 : f32
      %15 = vector.broadcast %cst_7 : f32 to vector<1x8x128xf32>
      %c0_8 = arith.constant 0 : index
      %c0_9 = arith.constant 0 : index
      %c0_10 = arith.constant 0 : index
      %16 = vector.load %arg6[%c0_8, %c0_9, %c0_10] : memref<1x8x128xf32, #tpu.memory_space<vmem>>, vector<1x8x128xf32>
      tpu.vector_store %arg6[%c0_8, %c0_9, %c0_10], %15 {strides = array<i32>} : memref<1x8x128xf32, #tpu.memory_space<vmem>>, vector<1x8x128xf32>,
    } else {
    }
    %c1_i32 = arith.constant 1 : i32
    %3 = arith.muli %arg0, %c1_i32 : i32
    %4 = arith.addi %3, %arg1 : i32
    %c16_i32 = arith.constant 16 : i32
    %5 = arith.muli %4, %c16_i32 : i32
    %c16_i32_1 = arith.constant 16 : i32
    %6 = arith.addi %5, %c16_i32_1 : i32
    %c16_i32_2 = arith.constant 16 : i32
    %7 = arith.cmpi sle, %6, %c16_i32_2 : i32
    %8 = arith.extui %7 : i1 to i32
    %c0_i32_3 = arith.constant 0 : i32
    %9 = arith.cmpi ne, %8, %c0_i32_3 : i32
    scf.if %9 {
      %c0 = arith.constant 0 : index
      %c0_5 = arith.constant 0 : index
      %13 = vector.load %arg4[%c0, %c0_5] : memref<16x128xf32, #tpu.memory_space<vmem>>, vector<16x128xf32>
      %cst = arith.constant 5.000000e-01 : f32
      %14 = vector.broadcast %cst : f32 to vector<16x128xf32>
      %15 = arith.cmpf oge, %13, %14 : vector<16x128xf32>
      %c0_6 = arith.constant 0 : index
      %c0_7 = arith.constant 0 : index
      %16 = vector.load %arg2[%c0_6, %c0_7] : memref<16x128xf32, #tpu.memory_space<vmem>>, vector<16x128xf32>
      %cst_8 = arith.constant 0.000000e+00 : f32
      %17 = vector.broadcast %cst_8 : f32 to vector<16x128xf32>
      %18 = arith.select %15, %16, %17 : vector<16x128xi1>, vector<16x128xf32>
      %c0_9 = arith.constant 0 : index
      %c0_10 = arith.constant 0 : index
      %19 = vector.load %arg3[%c0_9, %c0_10] : memref<16x128xf32, #tpu.memory_space<vmem>>, vector<16x128xf32>
      %cst_11 = arith.constant 0.000000e+00 : f32
      %20 = vector.broadcast %cst_11 : f32 to vector<16x128xf32>
      %21 = arith.select %15, %19, %20 : vector<16x128xi1>, vector<16x128xf32>
      %c0_12 = arith.constant 0 : index
      %c0_13 = arith.constant 0 : index
      %c0_14 = arith.constant 0 : index
      %22 = vector.load %arg5[%c0_12, %c0_13, %c0_14] : memref<1x8x128xf32, #tpu.memory_space<vmem>>, vector<1x8x128xf32>
      %23 = arith.mulf %18, %21 : vector<16x128xf32>
      %24 = vector.shape_cast %23 : vector<16x128xf32> to vector<2x8x128xf32>
      %cst_15 = arith.constant dense<0.000000e+00> : vector<8x128xf32>
      %25 = vector.multi_reduction <add>, %24, %cst_15 [0] : vector<2x8x128xf32> to vector<8x128xf32>
      %26 = vector.shape_cast %25 : vector<8x128xf32> to vector<1x8x128xf32>
      %27 = arith.addf %22, %26 : vector<1x8x128xf32>
      %c0_16 = arith.constant 0 : index
      %c0_17 = arith.constant 0 : index
      %c0_18 = arith.constant 0 : index
      %28 = vector.load %arg5[%c0_16, %c0_17, %c0_18] : memref<1x8x128xf32, #tpu.memory_space<vmem>>, vector<1x8x128xf32>
      tpu.vector_store %arg5[%c0_16, %c0_17, %c0_18], %27 {strides = array<i32>} : memref<1x8x128xf32, #tpu.memory_space<vmem>>, vector<1x8x128xf32>,
      %c0_19 = arith.constant 0 : index
      %c0_20 = arith.constant 0 : index
      %c0_21 = arith.constant 0 : index
      %29 = vector.load %arg6[%c0_19, %c0_20, %c0_21] : memref<1x8x128xf32, #tpu.memory_space<vmem>>, vector<1x8x128xf32>
      %30 = arith.addf %18, %21 : vector<16x128xf32>
      %31 = vector.shape_cast %30 : vector<16x128xf32> to vector<2x8x128xf32>
      %cst_22 = arith.constant dense<0.000000e+00> : vector<8x128xf32>
      %32 = vector.multi_reduction <add>, %31, %cst_22 [0] : vector<2x8x128xf32> to vector<8x128xf32>
      %33 = vector.shape_cast %32 : vector<8x128xf32> to vector<1x8x128xf32>
      %34 = arith.addf %29, %33 : vector<1x8x128xf32>
      %c0_23 = arith.constant 0 : index
      %c0_24 = arith.constant 0 : index
      %c0_25 = arith.constant 0 : index
      %35 = vector.load %arg6[%c0_23, %c0_24, %c0_25] : memref<1x8x128xf32, #tpu.memory_space<vmem>>, vector<1x8x128xf32>
      tpu.vector_store %arg6[%c0_23, %c0_24, %c0_25], %34 {strides = array<i32>} : memref<1x8x128xf32, #tpu.memory_space<vmem>>, vector<1x8x128xf32>,
    } else {
    }
    %true = arith.constant true
    %10 = arith.xori %7, %true : i1
    %11 = arith.extui %10 : i1 to i32
    %c0_i32_4 = arith.constant 0 : i32
    %12 = arith.cmpi ne, %11, %c0_i32_4 : i32
    scf.if %12 {
      %13 = tpu.iota {dimensions = array<i32: 0>} : vector<16x128xi32>
      %c16_i32_5 = arith.constant 16 : i32
      %14 = arith.subi %c16_i32_5, %5 : i32
      %15 = vector.broadcast %14 : i32 to vector<16x128xi32>
      %16 = arith.cmpi slt, %13, %15 : vector<16x128xi32>
      %c0 = arith.constant 0 : index
      %c0_6 = arith.constant 0 : index
      %17 = vector.load %arg4[%c0, %c0_6] : memref<16x128xf32, #tpu.memory_space<vmem>>, vector<16x128xf32>
      %cst = arith.constant 5.000000e-01 : f32
      %18 = vector.broadcast %cst : f32 to vector<16x128xf32>
      %19 = arith.cmpf oge, %17, %18 : vector<16x128xf32>
      %20 = arith.andi %19, %16 : vector<16x128xi1>
      %c0_7 = arith.constant 0 : index
      %c0_8 = arith.constant 0 : index
      %21 = vector.load %arg2[%c0_7, %c0_8] : memref<16x128xf32, #tpu.memory_space<vmem>>, vector<16x128xf32>
      %cst_9 = arith.constant 0.000000e+00 : f32
      %22 = vector.broadcast %cst_9 : f32 to vector<16x128xf32>
      %23 = arith.select %20, %21, %22 : vector<16x128xi1>, vector<16x128xf32>
      %c0_10 = arith.constant 0 : index
      %c0_11 = arith.constant 0 : index
      %24 = vector.load %arg3[%c0_10, %c0_11] : memref<16x128xf32, #tpu.memory_space<vmem>>, vector<16x128xf32>
      %cst_12 = arith.constant 0.000000e+00 : f32
      %25 = vector.broadcast %cst_12 : f32 to vector<16x128xf32>
      %26 = arith.select %20, %24, %25 : vector<16x128xi1>, vector<16x128xf32>
      %c0_13 = arith.constant 0 : index
      %c0_14 = arith.constant 0 : index
      %c0_15 = arith.constant 0 : index
      %27 = vector.load %arg5[%c0_13, %c0_14, %c0_15] : memref<1x8x128xf32, #tpu.memory_space<vmem>>, vector<1x8x128xf32>
      %28 = arith.mulf %23, %26 : vector<16x128xf32>
      %29 = vector.shape_cast %28 : vector<16x128xf32> to vector<2x8x128xf32>
      %cst_16 = arith.constant dense<0.000000e+00> : vector<8x128xf32>
      %30 = vector.multi_reduction <add>, %29, %cst_16 [0] : vector<2x8x128xf32> to vector<8x128xf32>
      %31 = vector.shape_cast %30 : vector<8x128xf32> to vector<1x8x128xf32>
      %32 = arith.addf %27, %31 : vector<1x8x128xf32>
      %c0_17 = arith.constant 0 : index
      %c0_18 = arith.constant 0 : index
      %c0_19 = arith.constant 0 : index
      %33 = vector.load %arg5[%c0_17, %c0_18, %c0_19] : memref<1x8x128xf32, #tpu.memory_space<vmem>>, vector<1x8x128xf32>
      tpu.vector_store %arg5[%c0_17, %c0_18, %c0_19], %32 {strides = array<i32>} : memref<1x8x128xf32, #tpu.memory_space<vmem>>, vector<1x8x128xf32>,
      %c0_20 = arith.constant 0 : index
      %c0_21 = arith.constant 0 : index
      %c0_22 = arith.constant 0 : index
      %34 = vector.load %arg6[%c0_20, %c0_21, %c0_22] : memref<1x8x128xf32, #tpu.memory_space<vmem>>, vector<1x8x128xf32>
      %35 = arith.addf %23, %26 : vector<16x128xf32>
      %36 = vector.shape_cast %35 : vector<16x128xf32> to vector<2x8x128xf32>
      %cst_23 = arith.constant dense<0.000000e+00> : vector<8x128xf32>
      %37 = vector.multi_reduction <add>, %36, %cst_23 [0] : vector<2x8x128xf32> to vector<8x128xf32>
      %38 = vector.shape_cast %37 : vector<8x128xf32> to vector<1x8x128xf32>
      %39 = arith.addf %34, %38 : vector<1x8x128xf32>
      %c0_24 = arith.constant 0 : index
      %c0_25 = arith.constant 0 : index
      %c0_26 = arith.constant 0 : index
      %40 = vector.load %arg6[%c0_24, %c0_25, %c0_26] : memref<1x8x128xf32, #tpu.memory_space<vmem>>, vector<1x8x128xf32>
      tpu.vector_store %arg6[%c0_24, %c0_25, %c0_26], %39 {strides = array<i32>} : memref<1x8x128xf32, #tpu.memory_space<vmem>>, vector<1x8x128xf32>,
    } else {
    }
    return
  }
  func.func @transform_0(%arg0: i32, %arg1: i32) -> (i32, i32) {
    %c1_i32 = arith.constant 1 : i32
    %0 = arith.muli %arg0, %c1_i32 : i32
    %1 = arith.addi %0, %arg1 : i32
    %c0_i32 = arith.constant 0 : i32
    %2 = arith.minsi %1, %c0_i32 : i32
    %c0_i32_0 = arith.constant 0 : i32
    %c0_i32_1 = arith.constant 0 : i32
    return %2, %c0_i32_0 : i32, i32
  }
  func.func @transform_1(%arg0: i32, %arg1: i32) -> (i32, i32) {
    %c1_i32 = arith.constant 1 : i32
    %0 = arith.muli %arg0, %c1_i32 : i32
    %1 = arith.addi %0, %arg1 : i32
    %c0_i32 = arith.constant 0 : i32
    %2 = arith.minsi %1, %c0_i32 : i32
    %c0_i32_0 = arith.constant 0 : i32
    %c0_i32_1 = arith.constant 0 : i32
    return %2, %c0_i32_0 : i32, i32
  }
  func.func @transform_2(%arg0: i32, %arg1: i32) -> (i32, i32) {
    %c1_i32 = arith.constant 1 : i32
    %0 = arith.muli %arg0, %c1_i32 : i32
    %1 = arith.addi %0, %arg1 : i32
    %c0_i32 = arith.constant 0 : i32
    %2 = arith.minsi %1, %c0_i32 : i32
    %c0_i32_0 = arith.constant 0 : i32
    %c0_i32_1 = arith.constant 0 : i32
    return %2, %c0_i32_0 : i32, i32
  }
  func.func @transform_3(%arg0: i32, %arg1: i32) -> (i32, i32, i32) {
    %c0_i32 = arith.constant 0 : i32
    %c0_i32_0 = arith.constant 0 : i32
    %c0_i32_1 = arith.constant 0 : i32
    return %arg0, %c0_i32, %c0_i32_0 : i32, i32, i32
  }
  func.func @transform_4(%arg0: i32, %arg1: i32) -> (i32, i32, i32) {
    %c0_i32 = arith.constant 0 : i32
    %c0_i32_0 = arith.constant 0 : i32
    %c0_i32_1 = arith.constant 0 : i32
    return %arg0, %c0_i32, %c0_i32_0 : i32, i32, i32
  }
}

</mosaic_0001>

<bundles_post_ra>
// kernel: tpu_custom_call.1
= control target key start
LH: loop header
LB: loop body
LE: loop exit
PB: predicated region body
PF: predicated region fallthrough
CT: control target
= control target key end

     0   :  { %10 = vsyncpa [#allocation3], 0  ;;  %s362_s0 = inlined_call_operand.hbm [shape: f32[16,128], index: 0, kind: input, shape index: {}]   ;;  %s363_s1 = inlined_call_operand.hbm [shape: f32[16,128], index: 1, kind: input, shape index: {}]   ;;  %s364_s2 = inlined_call_operand.hbm [shape: f32[16,128], index: 2, kind: input, shape index: {}]   ;;  %s365_s3 = inlined_call_operand.hbm [shape: f32[1,8,128], index: 3, kind: output, shape index: {0}]   ;;  %s366_s4 = inlined_call_operand.hbm [shape: f32[1,8,128], index: 4, kind: output, shape index: {1}]  }
   0x1   :  { %11 = vsyncpa [#allocation6], 0 }
   0x2   :  { %12 = vsyncpa [#allocation4], 0 }
   0x3   :  { %13 = vsyncpa [#allocation10], 0  ;;  %s315_s15 = smov [#allocation5]   ;;  %s316_s17 = smov [#allocation2]  }
   0x4   :  { %s43_s16 = sshll.u32 %s315_s15, 4  ;;  %s25_s18 = sshll.u32 %s316_s17, 4  ;;  %s44_s16 = int_to_ptr.vmem [resolvable:$true] %s43_s16  ;;  %s26_s18 = int_to_ptr.vmem [resolvable:$true] %s25_s18 }
   0x5   :  { %s215_s19 = scalar_lea.vmem %s44_s16, 256  ;;  %p220_p1 = scmp.lt.s32.totalorder %s44_s16, %s44_s16 }
   0x6   :  { %p216_p0 = scmp.ne.s32.totalorder %s44_s16, %s215_s19  ;;  %p221_p2 = scmp.lt.s32.totalorder %s215_s19, %s215_s19 }
   0x8   :  { %p222_p3 = por %p221_p2, %p220_p1 }
   0xa   :  { %p223_p4 = pnand %p222_p3, %p216_p0 }
   0xc   :  { %226 = shalt.err (!%p223_p4)
}
   0xd   :  { %s317_s20 = smov 128   ;;  %s318_s21 = smov 8  }
   0xe   :  { %49 = dma.hbm_to_vmem [thread:$0]  %s363_s1, 256, %s44_s16, [#allocation6], %s317_s20, %s317_s20, %s318_s21  }
   0xf   :  { %s235_s24 = scalar_lea.vmem %s26_s18, 256  ;;  %p240_p6 = scmp.lt.s32.totalorder %s26_s18, %s26_s18 }
  0x10   :  { %p236_p5 = scmp.ne.s32.totalorder %s26_s18, %s235_s24  ;;  %p241_p7 = scmp.lt.s32.totalorder %s235_s24, %s235_s24 }
  0x12   :  { %p242_p8 = por %p241_p7, %p240_p6 }
  0x14   :  { %p243_p9 = pnand %p242_p8, %p236_p5 }
  0x16   :  { %246 = shalt.err (!%p243_p9)
}
  0x17   :  { %31 = dma.hbm_to_vmem [thread:$0]  %s362_s0, 256, %s26_s18, [#allocation3], %s317_s20, %s317_s20, %s318_s21  }
  0x18   :  { %s319_s27 = smov [#allocation7]  }
  0x19   :  { %s61_s28 = sshll.u32 %s319_s27, 4  ;;  %s62_s28 = int_to_ptr.vmem [resolvable:$true] %s61_s28 }
  0x1a   :  { %s255_s29 = scalar_lea.vmem %s62_s28, 256  ;;  %p260_p11 = scmp.lt.s32.totalorder %s62_s28, %s62_s28 }
  0x1b   :  { %p256_p10 = scmp.ne.s32.totalorder %s62_s28, %s255_s29  ;;  %p261_p12 = scmp.lt.s32.totalorder %s255_s29, %s255_s29 }
  0x1d   :  { %p262_p13 = por %p261_p12, %p260_p11 }
  0x1f   :  { %p263_p0 = pnand %p262_p13, %p256_p10 }
  0x21   :  { %266 = shalt.err (!%p263_p0)
}
  0x22   :  { %67 = dma.hbm_to_vmem [thread:$0]  %s364_s2, 256, %s62_s28, [#allocation6], %s317_s20, %s317_s20, %s318_s21  }
  0x23   :  { %307 = dma.done.wait [#allocation3], 256  }
  0x24   :  { %308 = vsyncadd [#allocation3], 4294967040 }
  0x25   :  { %309 = dma.done.wait [#allocation6], 512  }
  0x26   :  { %310 = vsyncadd [#allocation6], 4294966784  ;;  %v102_v0 = vld [vmem:[#allocation7] sm:$0xff]  ;;  %v103_v1 = vld [vmem:[#allocation7 + $0x8] sm:$0xff]  ;;  %s320_s0 = smov [#allocation8]   ;;  %s321_s5 = smov [#allocation9]  }
  0x27   :  { %v106_v2 = vld [vmem:[#allocation2] sm:$0xff]  ;;  %vm104_vm0 = vcmp.ge.f32.partialorder %v102_v0, 0.5  ;;  %vm105_vm1 = vcmp.ge.f32.partialorder %v103_v1, 0.5  ;;  %v107_v3 = vld [vmem:[#allocation2 + $0x8] sm:$0xff]  ;;  %v110_v4 = vld [vmem:[#allocation5] sm:$0xff]  ;;  %s169_s2 = sshll.u32 %s320_s0, 4  ;;  %s170_s2 = int_to_ptr.vmem [resolvable:$true] %s169_s2 }
  0x28   :  { %v111_v5 = vld [vmem:[#allocation5 + $0x8] sm:$0xff]  ;;  %v108_v6 = vsel %vm104_vm0, %v106_v2, 0.0  ;;  %v109_v7 = vsel %vm105_vm1, %v107_v3, 0.0  ;;  %v112_v8 = vsel %vm104_vm0, %v110_v4, 0.0  ;;  %s179_s6 = sshll.u32 %s321_s5, 4  ;;  %s267_s7 = scalar_lea.vmem %s170_s2, 128  ;;  %s180_s6 = int_to_ptr.vmem [resolvable:$true] %s179_s6 }
  0x29   :  { %v113_v9 = vsel %vm105_vm1, %v111_v5, 0.0  ;;  %v115_v10 = vmul.f32 %v112_v8, %v108_v6  ;;  %v121_v12 = vadd.f32 %v112_v8, %v108_v6  ;;  %p268_p1 = scmp.ne.s32.totalorder %s170_s2, %s267_s7  ;;  %p272_p2 = scmp.lt.s32.totalorder %s170_s2, %s170_s2 }
  0x2a   :  { %v116_v11 = vmul.f32 %v113_v9, %v109_v7  ;;  %v122_v13 = vadd.f32 %v113_v9, %v109_v7  ;;  %p273_p3 = scmp.lt.s32.totalorder %s267_s7, %s267_s7 }
  0x2c   :  { %v117_v14 = vadd.f32 %v116_v11, %v115_v10  ;;  %v123_v15 = vadd.f32 %v122_v13, %v121_v12  ;;  %p274_p4 = por %p273_p3, %p272_p2 }
  0x2e   :  { %119 = vst [vmem:[#allocation8] sm:$0xff] %v117_v14  ;;  %125 = vst [vmem:[#allocation9] sm:$0xff] %v123_v15  ;;  %p275_p5 = pnand %p274_p4, %p268_p1 }
  0x30   :  { %278 = shalt.err (!%p275_p5)
}
  0x31   :  { %172 = dma.vmem_to_hbm [thread:$0]  %s170_s2, 128, %s365_s3, [#allocation4]  }
  0x32   :  { %s287_s10 = scalar_lea.vmem %s180_s6, 128  ;;  %p292_p7 = scmp.lt.s32.totalorder %s180_s6, %s180_s6 }
  0x33   :  { %p288_p6 = scmp.ne.s32.totalorder %s180_s6, %s287_s10  ;;  %p293_p8 = scmp.lt.s32.totalorder %s287_s10, %s287_s10 }
  0x35   :  { %p294_p9 = por %p293_p8, %p292_p7 }
  0x37   :  { %p295_p10 = pnand %p294_p9, %p288_p6 }
  0x39   :  { %298 = shalt.err (!%p295_p10)
}
  0x3a   :  { %182 = dma.vmem_to_hbm [thread:$0]  %s180_s6, 128, %s366_s4, [#allocation10]  }
  0x3b   :  { %311 = dma.done.wait [#allocation4], 128  }
  0x3c   :  { %312 = vsyncadd [#allocation4], 4294967168 }
  0x3d   :  { %313 = dma.done.wait [#allocation10], 128  }
  0x3e   :  { %314 = vsyncadd [#allocation10], 4294967168 }
  0x3f   :  { %189 = vsyncpa [#allocation3], 1 }
  0x40   :  { %190 = vsyncpa [#allocation6], 1 }
  0x41   :  { %191 = vsyncpa [#allocation4], 1 }
  0x42   :  { %192 = vsyncpa [#allocation10], 1 }

</bundles_post_ra>
